<compile_context>
chip_gen: v6e
topology: v6e:2x2x1
jax: 0.10.0
libtpu: 0.0.40
codegen_flags: <defaults>
</compile_context>

<pallas_src>
import math
import jax
import jax.numpy as jnp
from jax.experimental import pallas as pl
from jax.experimental.pallas import tpu as pltpu

LN_EPS = 1e-5


# ---------------------------------------------------------------------------
# Pallas kernel: fused actor+critic towers + value head, all lane-dense (B, 2H).
# ---------------------------------------------------------------------------
def mlp_base_kernel(x_ref, w1_ref, w2_ref, p_ref, gbv_ref, out_ref):
    H2 = out_ref.shape[-1]       # 2H (lane-dense, 128 for H=64)
    H = H2 // 2

    x = x_ref[...]               # (tb, D)
    P = p_ref[...]               # (2H, 2H) per-half mean projector (constant)
    gbv = gbv_ref[...]           # (6, 2H): g1, b1, g2, b2, vw_pad, vb_row

    def ln_tanh(h, g, b):
        # Per-half LayerNorm via projector matmuls (reduce + broadcast in one MXU pass),
        # single-pass variance E[h^2] - mean^2, then affine + tanh (EUP).
        mean = jnp.dot(h, P, preferred_element_type=jnp.float32)
        ex2 = jnp.dot(h * h, P, preferred_element_type=jnp.float32)
        var = jnp.maximum(ex2 - mean * mean, 0.0)
        normed = (h - mean) * jax.lax.rsqrt(var + LN_EPS)
        return jnp.tanh(normed * g + b)

    # layer 1: one 128-lane matmul for both towers
    h = jnp.dot(x, w1_ref[...], preferred_element_type=jnp.float32)       # (tb, 2H)
    h = ln_tanh(h, gbv[0:1, :], gbv[1:2, :])

    # layer 2: block-diagonal weight keeps towers independent, still one MXU pass
    h = jnp.dot(h, w2_ref[...], preferred_element_type=jnp.float32)       # (tb, 2H)
    h = ln_tanh(h, gbv[2:3, :], gbv[3:4, :])                              # [ha | hc]

    # value head on VPU + XLU (no MXU round-trip): vw row is zero over the actor half,
    # bias is pre-replicated across the row.
    v = jnp.sum(h * gbv[4:5, :], axis=-1, keepdims=True)                  # (tb, 1)
    v = jnp.broadcast_to(v, h.shape) + gbv[5:6, :]                        # (tb, 2H)

    # lane-dense output slab: [0,H) = hidden_actor, [H,2H) = value (broadcast)
    lane = jax.lax.broadcasted_iota(jnp.int32, h.shape, 1)
    out_ref[...] = jnp.where(lane < H, h, v)


def mlp_base_forward(x, packed, rnn_hxs, *, max_rows_per_step=512):
    """Returns (value, hidden_actor, rnn_hxs) like MLPBase.forward (recurrent=False)."""
    B, D = x.shape
    H2 = packed["w1"].shape[1]
    H = H2 // 2

    # Batch tiling: single grid step for small batches; tile rows (<=512, v7x VMEM budget)
    # for large batches, weights stay VMEM-resident across steps.
    if B <= max_rows_per_step:
        tb, Bp, xp = B, B, x
    else:
        tb = max_rows_per_step
        Bp = ((B + tb - 1) // tb) * tb
        xp = jnp.pad(x, ((0, Bp - B), (0, 0)))

    out = pl.pallas_call(
        mlp_base_kernel,
        grid=(Bp // tb,),
        in_specs=[
            pl.BlockSpec((tb, D), lambda i: (i, 0)),     # x (batch-tiled)
            pl.BlockSpec((D, H2), lambda i: (0, 0)),     # W1 = [aw1 | cw1]
            pl.BlockSpec((H2, H2), lambda i: (0, 0)),    # W2 = blockdiag(aw2, cw2)
            pl.BlockSpec((H2, H2), lambda i: (0, 0)),    # P  (per-half mean projector)
            pl.BlockSpec((6, H2), lambda i: (0, 0)),     # gamma/beta/vw/vb slab
        ],
        out_specs=pl.BlockSpec((tb, H2), lambda i: (i, 0)),
        out_shape=jax.ShapeDtypeStruct((Bp, H2), jnp.float32),
        compiler_params=pltpu.CompilerParams(
            dimension_semantics=("parallel",)),          # megacore batch split on v7x
    )(xp, packed["w1"], packed["w2"], packed["P"], packed["gbv"])

    hidden_actor = out[:B, :H]
    value = out[:B, H:H + 1]
    return value, hidden_actor, rnn_hxs


# ---------------------------------------------------------------------------
# Deterministic parameter init (torch orthogonal_ with gain=sqrt(2), bias=0;
# LayerNorm gamma=1 beta=0), plus packing into the fused kernel layout.
# ---------------------------------------------------------------------------
def orthogonal_(key, out_features, in_features, gain):
    rows, cols = out_features, in_features
    a = jax.random.normal(key, (rows, cols), jnp.float32)
    transposed = rows < cols
    if transposed:
        a = a.T
    q, r = jnp.linalg.qr(a)
    d = jnp.sign(jnp.diag(r))
    q = q * d[None, :]
    if transposed:
        q = q.T
    return gain * q  # (out_features, in_features), torch convention


def make_params(key, num_inputs, hidden_size):
    gain = math.sqrt(2.0)
    keys = jax.random.split(key, 5)
    H = hidden_size

    def linear_T(k, out_f, in_f):
        # stored as [in, out] so the kernel computes x @ W
        return orthogonal_(k, out_f, in_f, gain).T

    ones = jnp.ones((1, H), jnp.float32)
    zeros = jnp.zeros((1, H), jnp.float32)
    return {
        # actor
        "aw1": linear_T(keys[0], H, num_inputs), "ag1": ones, "ab1": zeros,
        "aw2": linear_T(keys[1], H, H),          "ag2": ones, "ab2": zeros,
        # critic
        "cw1": linear_T(keys[2], H, num_inputs), "cg1": ones, "cb1": zeros,
        "cw2": linear_T(keys[3], H, H),          "cg2": ones, "cb2": zeros,
        # critic_linear (Linear(H, 1) with bias)
        "vw": linear_T(keys[4], 1, H),           # (H, 1)
        "vb": jnp.zeros((1, 1), jnp.float32),
    }


def pack_params(p, hidden_size):
    H = hidden_size
    H2 = 2 * H
    w1 = jnp.concatenate([p["aw1"], p["cw1"]], axis=1)                       # (D, 2H)
    z = jnp.zeros((H, H), jnp.float32)
    w2 = jnp.concatenate(
        [jnp.concatenate([p["aw2"], z], axis=1),
         jnp.concatenate([z, p["cw2"]], axis=1)], axis=0)                    # (2H, 2H)

    g1 = jnp.concatenate([p["ag1"], p["cg1"]], axis=1)
    b1 = jnp.concatenate([p["ab1"], p["cb1"]], axis=1)
    g2 = jnp.concatenate([p["ag2"], p["cg2"]], axis=1)
    b2 = jnp.concatenate([p["ab2"], p["cb2"]], axis=1)
    vw_pad = jnp.concatenate([jnp.zeros((1, H), jnp.float32), p["vw"].T], axis=1)  # (1, 2H)
    vb_row = jnp.full((1, H2), p["vb"][0, 0], jnp.float32)
    gbv = jnp.concatenate([g1, b1, g2, b2, vw_pad, vb_row], axis=0)          # (6, 2H)

    # per-half mean projector: P[i, j] = 1/H if i, j in same half else 0
    half = jnp.arange(H2) < H
    P = (half[:, None] == half[None, :]).astype(jnp.float32) / float(H)      # (2H, 2H)
    return {"w1": w1, "w2": w2, "P": P, "gbv": gbv}


# ---------------------------------------------------------------------------
# Pure-JAX reference (unfused, torch-style LN) for correctness checking.
# ---------------------------------------------------------------------------
def mlp_base_reference(x, p):
    def blk(h, w, g, b):
        h = h @ w
        m = jnp.mean(h, axis=-1, keepdims=True)
        v = jnp.mean((h - m) ** 2, axis=-1, keepdims=True)
        return jnp.tanh((h - m) * jax.lax.rsqrt(v + LN_EPS) * g + b)

    ha = blk(blk(x, p["aw1"], p["ag1"], p["ab1"]), p["aw2"], p["ag2"], p["ab2"])
    hc = blk(blk(x, p["cw1"], p["cg1"], p["cb1"]), p["cw2"], p["cg2"], p["cb2"])
    value = hc @ p["vw"] + p["vb"]
    return value, ha


# ---------------------------------------------------------------------------
if __name__ == "__main__":
    NUM_INPUTS = 16
    HIDDEN = 64
    BATCH = 8

    key = jax.random.PRNGKey(0)
    k_params, k_x = jax.random.split(key)

    params = make_params(k_params, NUM_INPUTS, HIDDEN)
    packed = pack_params(params, HIDDEN)

    x = jax.random.normal(k_x, (BATCH, NUM_INPUTS), jnp.float32)
    # non-recurrent => recurrent_hidden_state_size == 1; masks unused in forward
    rnn_hxs = jnp.zeros((BATCH, 1), jnp.float32)
    masks = jnp.ones((BATCH, 1), jnp.float32)  # unused (recurrent=False)

    value, hidden_actor, rnn_hxs_out = mlp_base_forward(x, packed, rnn_hxs)
    jax.block_until_ready((value, hidden_actor, rnn_hxs_out))

    # shape / range checks
    assert value.shape == (BATCH, 1)
    assert hidden_actor.shape == (BATCH, HIDDEN)
    assert rnn_hxs_out.shape == (BATCH, 1)
    assert bool(jnp.all(jnp.isfinite(value)))
    assert bool(jnp.all(jnp.abs(hidden_actor) <= 1.0))  # tanh output range

    # numerical check against the unfused pure-JAX reference
    value_ref, actor_ref = mlp_base_reference(x, params)
    assert float(jnp.max(jnp.abs(value - value_ref))) < 1e-4
    assert float(jnp.max(jnp.abs(hidden_actor - actor_ref))) < 1e-4

    print("KERNEL_OK")
</pallas_src>

<mosaic_0001>
module attributes {stable_mosaic.version = 11 : i64} {
  func.func @mlp_base_kernel(%arg0: i32, %arg1: memref<8x16xf32, #tpu.memory_space<vmem>>, %arg2: memref<16x128xf32, #tpu.memory_space<vmem>>, %arg3: memref<128x128xf32, #tpu.memory_space<vmem>>, %arg4: memref<128x128xf32, #tpu.memory_space<vmem>>, %arg5: memref<6x128xf32, #tpu.memory_space<vmem>>, %arg6: memref<8x128xf32, #tpu.memory_space<vmem>>) attributes {dimension_semantics = [#tpu.dimension_semantics<parallel>], iteration_bounds = array<i64: 1>, scalar_prefetch = 0 : i64, scratch_operands = 0 : i64, tpu.core_type = #tpu.core_type<tc>, window_params = [{transform_indices = @transform_0, window_bounds = array<i64: 8, 16>}, {pipeline_mode = #tpu.pipeline_mode<synchronous>, transform_indices = @transform_1, window_bounds = array<i64: 16, 128>}, {pipeline_mode = #tpu.pipeline_mode<synchronous>, transform_indices = @transform_2, window_bounds = array<i64: 128, 128>}, {pipeline_mode = #tpu.pipeline_mode<synchronous>, transform_indices = @transform_3, window_bounds = array<i64: 128, 128>}, {pipeline_mode = #tpu.pipeline_mode<synchronous>, transform_indices = @transform_4, window_bounds = array<i64: 6, 128>}, {transform_indices = @transform_5, window_bounds = array<i64: 8, 128>}]} {
    %c0 = arith.constant 0 : index
    %c0_0 = arith.constant 0 : index
    %0 = vector.load %arg1[%c0, %c0_0] : memref<8x16xf32, #tpu.memory_space<vmem>>, vector<8x16xf32>
    %c0_1 = arith.constant 0 : index
    %c0_2 = arith.constant 0 : index
    %1 = vector.load %arg4[%c0_1, %c0_2] : memref<128x128xf32, #tpu.memory_space<vmem>>, vector<128x128xf32>
    %c0_3 = arith.constant 0 : index
    %c0_4 = arith.constant 0 : index
    %2 = vector.load %arg5[%c0_3, %c0_4] : memref<6x128xf32, #tpu.memory_space<vmem>>, vector<6x128xf32>
    %c0_5 = arith.constant 0 : index
    %c0_6 = arith.constant 0 : index
    %3 = vector.load %arg2[%c0_5, %c0_6] : memref<16x128xf32, #tpu.memory_space<vmem>>, vector<16x128xf32>
    %cst = arith.constant dense<0.000000e+00> : vector<8x128xf32>
    %4 = tpu.matmul %0, %3, %cst {dimension_numbers = #tpu.dot_dimension_numbers<[1], [0], [0], [1], [0, 0, 1, 1], [], []>} : vector<8x16xf32>, vector<16x128xf32>, vector<8x128xf32> -> vector<8x128xf32>
    %5 = vector.extract_strided_slice %2 {offsets = [0, 0], sizes = [1, 128], strides = [1, 1]} : vector<6x128xf32> to vector<1x128xf32>
    %6 = vector.extract_strided_slice %2 {offsets = [1, 0], sizes = [1, 128], strides = [1, 1]} : vector<6x128xf32> to vector<1x128xf32>
    %cst_7 = arith.constant dense<0.000000e+00> : vector<8x128xf32>
    %7 = tpu.matmul %4, %1, %cst_7 {dimension_numbers = #tpu.dot_dimension_numbers<[1], [0], [0], [1], [0, 0, 1, 1], [], []>} : vector<8x128xf32>, vector<128x128xf32>, vector<8x128xf32> -> vector<8x128xf32>
    %8 = arith.mulf %4, %4 : vector<8x128xf32>
    %cst_8 = arith.constant dense<0.000000e+00> : vector<8x128xf32>
    %9 = tpu.matmul %8, %1, %cst_8 {dimension_numbers = #tpu.dot_dimension_numbers<[1], [0], [0], [1], [0, 0, 1, 1], [], []>} : vector<8x128xf32>, vector<128x128xf32>, vector<8x128xf32> -> vector<8x128xf32>
    %10 = arith.mulf %7, %7 : vector<8x128xf32>
    %11 = arith.subf %9, %10 : vector<8x128xf32>
    %cst_9 = arith.constant 0.000000e+00 : f32
    %12 = vector.broadcast %cst_9 : f32 to vector<8x128xf32>
    %13 = arith.maximumf %11, %12 : vector<8x128xf32>
    %14 = arith.subf %4, %7 : vector<8x128xf32>
    %cst_10 = arith.constant 9.99999974E-6 : f32
    %15 = vector.broadcast %cst_10 : f32 to vector<8x128xf32>
    %16 = arith.addf %13, %15 : vector<8x128xf32>
    %17 = math.rsqrt %16 : vector<8x128xf32>
    %18 = arith.mulf %14, %17 : vector<8x128xf32>
    %19 = vector.broadcast %5 : vector<1x128xf32> to vector<8x128xf32>
    %20 = arith.mulf %18, %19 : vector<8x128xf32>
    %21 = vector.broadcast %6 : vector<1x128xf32> to vector<8x128xf32>
    %22 = arith.addf %20, %21 : vector<8x128xf32>
    %23 = math.tanh %22 : vector<8x128xf32>
    %c0_11 = arith.constant 0 : index
    %c0_12 = arith.constant 0 : index
    %24 = vector.load %arg3[%c0_11, %c0_12] : memref<128x128xf32, #tpu.memory_space<vmem>>, vector<128x128xf32>
    %cst_13 = arith.constant dense<0.000000e+00> : vector<8x128xf32>
    %25 = tpu.matmul %23, %24, %cst_13 {dimension_numbers = #tpu.dot_dimension_numbers<[1], [0], [0], [1], [0, 0, 1, 1], [], []>} : vector<8x128xf32>, vector<128x128xf32>, vector<8x128xf32> -> vector<8x128xf32>
    %26 = vector.extract_strided_slice %2 {offsets = [2, 0], sizes = [1, 128], strides = [1, 1]} : vector<6x128xf32> to vector<1x128xf32>
    %27 = vector.extract_strided_slice %2 {offsets = [3, 0], sizes = [1, 128], strides = [1, 1]} : vector<6x128xf32> to vector<1x128xf32>
    %cst_14 = arith.constant dense<0.000000e+00> : vector<8x128xf32>
    %28 = tpu.matmul %25, %1, %cst_14 {dimension_numbers = #tpu.dot_dimension_numbers<[1], [0], [0], [1], [0, 0, 1, 1], [], []>} : vector<8x128xf32>, vector<128x128xf32>, vector<8x128xf32> -> vector<8x128xf32>
    %29 = arith.mulf %25, %25 : vector<8x128xf32>
    %cst_15 = arith.constant dense<0.000000e+00> : vector<8x128xf32>
    %30 = tpu.matmul %29, %1, %cst_15 {dimension_numbers = #tpu.dot_dimension_numbers<[1], [0], [0], [1], [0, 0, 1, 1], [], []>} : vector<8x128xf32>, vector<128x128xf32>, vector<8x128xf32> -> vector<8x128xf32>
    %31 = arith.mulf %28, %28 : vector<8x128xf32>
    %32 = arith.subf %30, %31 : vector<8x128xf32>
    %cst_16 = arith.constant 0.000000e+00 : f32
    %33 = vector.broadcast %cst_16 : f32 to vector<8x128xf32>
    %34 = arith.maximumf %32, %33 : vector<8x128xf32>
    %35 = arith.subf %25, %28 : vector<8x128xf32>
    %cst_17 = arith.constant 9.99999974E-6 : f32
    %36 = vector.broadcast %cst_17 : f32 to vector<8x128xf32>
    %37 = arith.addf %34, %36 : vector<8x128xf32>
    %38 = math.rsqrt %37 : vector<8x128xf32>
    %39 = arith.mulf %35, %38 : vector<8x128xf32>
    %40 = vector.broadcast %26 : vector<1x128xf32> to vector<8x128xf32>
    %41 = arith.mulf %39, %40 : vector<8x128xf32>
    %42 = vector.broadcast %27 : vector<1x128xf32> to vector<8x128xf32>
    %43 = arith.addf %41, %42 : vector<8x128xf32>
    %44 = math.tanh %43 : vector<8x128xf32>
    %45 = vector.extract_strided_slice %2 {offsets = [4, 0], sizes = [1, 128], strides = [1, 1]} : vector<6x128xf32> to vector<1x128xf32>
    %46 = vector.broadcast %45 : vector<1x128xf32> to vector<8x128xf32>
    %47 = arith.mulf %44, %46 : vector<8x128xf32>
    %cst_18 = arith.constant dense<0.000000e+00> : vector<8xf32>
    %48 = vector.multi_reduction <add>, %47, %cst_18 [1] : vector<8x128xf32> to vector<8xf32>
    %49 = vector.shape_cast %48 : vector<8xf32> to vector<8x1xf32>
    %50 = vector.shape_cast %49 : vector<8x1xf32> to vector<8x1xf32>
    %51 = vector.broadcast %50 : vector<8x1xf32> to vector<8x128xf32>
    %52 = vector.extract_strided_slice %2 {offsets = [5, 0], sizes = [1, 128], strides = [1, 1]} : vector<6x128xf32> to vector<1x128xf32>
    %53 = vector.broadcast %52 : vector<1x128xf32> to vector<8x128xf32>
    %54 = arith.addf %51, %53 : vector<8x128xf32>
    %55 = tpu.iota {dimensions = array<i32: 1>} : vector<8x128xi32>
    %c64_i32 = arith.constant 64 : i32
    %56 = vector.broadcast %c64_i32 : i32 to vector<8x128xi32>
    %57 = arith.cmpi slt, %55, %56 : vector<8x128xi32>
    %58 = arith.select %57, %44, %54 : vector<8x128xi1>, vector<8x128xf32>
    %c0_19 = arith.constant 0 : index
    %c0_20 = arith.constant 0 : index
    %59 = vector.load %arg6[%c0_19, %c0_20] : memref<8x128xf32, #tpu.memory_space<vmem>>, vector<8x128xf32>
    tpu.vector_store %arg6[%c0_19, %c0_20], %58 {strides = array<i32>} : memref<8x128xf32, #tpu.memory_space<vmem>>, vector<8x128xf32>,
    return
  }
  func.func @transform_0(%arg0: i32) -> (i32, i32) {
    %c0_i32 = arith.constant 0 : i32
    %c0_i32_0 = arith.constant 0 : i32
    return %arg0, %c0_i32 : i32, i32
  }
  func.func @transform_1(%arg0: i32) -> (i32, i32) {
    %c0_i32 = arith.constant 0 : i32
    %c0_i32_0 = arith.constant 0 : i32
    %c0_i32_1 = arith.constant 0 : i32
    return %c0_i32, %c0_i32_0 : i32, i32
  }
  func.func @transform_2(%arg0: i32) -> (i32, i32) {
    %c0_i32 = arith.constant 0 : i32
    %c0_i32_0 = arith.constant 0 : i32
    %c0_i32_1 = arith.constant 0 : i32
    return %c0_i32, %c0_i32_0 : i32, i32
  }
  func.func @transform_3(%arg0: i32) -> (i32, i32) {
    %c0_i32 = arith.constant 0 : i32
    %c0_i32_0 = arith.constant 0 : i32
    %c0_i32_1 = arith.constant 0 : i32
    return %c0_i32, %c0_i32_0 : i32, i32
  }
  func.func @transform_4(%arg0: i32) -> (i32, i32) {
    %c0_i32 = arith.constant 0 : i32
    %c0_i32_0 = arith.constant 0 : i32
    %c0_i32_1 = arith.constant 0 : i32
    return %c0_i32, %c0_i32_0 : i32, i32
  }
  func.func @transform_5(%arg0: i32) -> (i32, i32) {
    %c0_i32 = arith.constant 0 : i32
    %c0_i32_0 = arith.constant 0 : i32
    return %arg0, %c0_i32 : i32, i32
  }
}

</mosaic_0001>

<bundles_post_ra>
// kernel: tpu_custom_call.1
= control target key start
LH: loop header
LB: loop body
LE: loop exit
PB: predicated region body
PF: predicated region fallthrough
CT: control target
= control target key end

     0   :  { %10 = vsyncpa [#allocation3], 0  ;;  %s1315_s0 = inlined_call_operand.hbm [shape: f32[8,16], index: 0, kind: input, shape index: {}]   ;;  %s1316_s1 = inlined_call_operand.hbm [shape: f32[16,128], index: 1, kind: input, shape index: {}]   ;;  %s1317_s2 = inlined_call_operand.hbm [shape: f32[128,128], index: 2, kind: input, shape index: {}]   ;;  %s1318_s3 = inlined_call_operand.hbm [shape: f32[128,128], index: 3, kind: input, shape index: {}]   ;;  %s1319_s4 = inlined_call_operand.hbm [shape: f32[6,128], index: 4, kind: input, shape index: {}]   ;;  %s1320_s5 = inlined_call_operand.hbm [shape: f32[8,128], index: 5, kind: output, shape index: {}]  }
   0x1   :  { %11 = vsyncpa [#allocation6], 0 }
   0x2   :  { %12 = vsyncpa [#allocation9], 0 }
   0x3   :  { %13 = vsyncpa [#allocation4], 0  ;;  %s1034_s18 = smov [#allocation5]  }
   0x4   :  { %s29_s19 = sshll.u32 %s1034_s18, 4  ;;  %s30_s19 = int_to_ptr.vmem [resolvable:$true] %s29_s19 }
   0x5   :  { %s914_s20 = scalar_lea.vmem %s30_s19, 256  ;;  %p919_p1 = scmp.lt.s32.totalorder %s30_s19, %s30_s19 }
   0x6   :  { %p915_p0 = scmp.ne.s32.totalorder %s30_s19, %s914_s20  ;;  %p920_p2 = scmp.lt.s32.totalorder %s914_s20, %s914_s20 }
   0x8   :  { %p921_p3 = por %p920_p2, %p919_p1 }
   0xa   :  { %p922_p4 = pnand %p921_p3, %p915_p0 }
   0xc   :  { %925 = shalt.err (!%p922_p4)
}
   0xd   :  { %s1035_s21 = smov 128   ;;  %s1036_s22 = smov 8  }
   0xe   :  { %35 = dma.hbm_to_vmem [thread:$0]  %s1316_s1, 256, %s30_s19, [#allocation6], %s1035_s21, %s1035_s21, %s1036_s22  }
   0xf   :  { %s1037_s25 = smov [#allocation8]   ;;  %s1038_s27 = smov [#allocation2]  }
  0x10   :  { %s53_s26 = sshll.u32 %s1037_s25, 4  ;;  %s20_s28 = sshll.u32 %s1038_s27, 4  ;;  %s54_s26 = int_to_ptr.vmem [resolvable:$true] %s53_s26  ;;  %s21_s28 = int_to_ptr.vmem [resolvable:$true] %s20_s28 }
  0x11   :  { %s934_s29 = scalar_lea.vmem %s54_s26, 2048  ;;  %p939_p6 = scmp.lt.s32.totalorder %s54_s26, %s54_s26 }
  0x12   :  { %p935_p5 = scmp.ne.s32.totalorder %s54_s26, %s934_s29  ;;  %p940_p7 = scmp.lt.s32.totalorder %s934_s29, %s934_s29 }
  0x14   :  { %p941_p8 = por %p940_p7, %p939_p6 }
  0x16   :  { %p942_p9 = pnand %p941_p8, %p935_p5 }
  0x18   :  { %945 = shalt.err (!%p942_p9)
}
  0x19   :  { %59 = dma.hbm_to_vmem [thread:$0]  %s1318_s3, 2048, %s54_s26, [#allocation9], %s1035_s21, %s1035_s21, %s1036_s22  }
  0x1a   :  { %s954_s1 = scalar_lea.vmem %s21_s28, 128  ;;  %p959_p11 = scmp.lt.s32.totalorder %s21_s28, %s21_s28 }
  0x1b   :  { %p955_p10 = scmp.ne.s32.totalorder %s21_s28, %s954_s1  ;;  %p960_p12 = scmp.lt.s32.totalorder %s954_s1, %s954_s1 }
  0x1d   :  { %p961_p13 = por %p960_p12, %p959_p11 }
  0x1f   :  { %p962_p0 = pnand %p961_p13, %p955_p10 }
  0x21   :  { %965 = shalt.err (!%p962_p0)
}
  0x22   :  { %23 = dma.hbm_to_vmem [thread:$0]  %s1315_s0, 128, %s21_s28, [#allocation3]  }
  0x23   :  { %s1039_s9 = smov [#allocation7]   ;;  %s1040_s11 = smov [#allocation10]  }
  0x24   :  { %s41_s10 = sshll.u32 %s1039_s9, 4  ;;  %s66_s12 = sshll.u32 %s1040_s11, 4  ;;  %s42_s10 = int_to_ptr.vmem [resolvable:$true] %s41_s10  ;;  %s67_s12 = int_to_ptr.vmem [resolvable:$true] %s66_s12 }
  0x25   :  { %s974_s13 = scalar_lea.vmem %s42_s10, 2048  ;;  %p979_p2 = scmp.lt.s32.totalorder %s42_s10, %s42_s10 }
  0x26   :  { %p975_p1 = scmp.ne.s32.totalorder %s42_s10, %s974_s13  ;;  %p980_p3 = scmp.lt.s32.totalorder %s974_s13, %s974_s13 }
  0x28   :  { %p981_p4 = por %p980_p3, %p979_p2 }
  0x2a   :  { %p982_p5 = pnand %p981_p4, %p975_p1 }
  0x2c   :  { %985 = shalt.err (!%p982_p5)
}
  0x2d   :  { %47 = dma.hbm_to_vmem [thread:$0]  %s1317_s2, 2048, %s42_s10, [#allocation6], %s1035_s21, %s1035_s21, %s1036_s22  }
  0x2e   :  { %s994_s0 = scalar_lea.vmem %s67_s12, 128  ;;  %p999_p7 = scmp.lt.s32.totalorder %s67_s12, %s67_s12 }
  0x2f   :  { %p995_p6 = scmp.ne.s32.totalorder %s67_s12, %s994_s0  ;;  %p1000_p8 = scmp.lt.s32.totalorder %s994_s0, %s994_s0 }
  0x31   :  { %p1001_p9 = por %p1000_p8, %p999_p7 }
  0x33   :  { %p1002_p10 = pnand %p1001_p9, %p995_p6 }
  0x35   :  { %1005 = shalt.err (!%p1002_p10)
}
  0x36   :  { %69 = dma.hbm_to_vmem [thread:$0]  %s1319_s4, 128, %s67_s12, [#allocation9]  }
  0x37   :  { %1026 = dma.done.wait [#allocation3], 128  }
  0x38   :  { %1027 = vsyncadd [#allocation3], 4294967168 }
  0x39   :  { %1028 = dma.done.wait [#allocation6], 2304  }
  0x3a   :  { %1029 = vsyncadd [#allocation6], 4294964992 }
  0x3b   :  { %1030 = dma.done.wait [#allocation9], 2176  }
  0x3c   :  { %1031 = vsyncadd [#allocation9], 4294965120  ;;  %v1041_v0 = vmov 0.0   ;;  %vm1042_vm0 = vmmov 0   ;;  %v104_v1 = vld [vmem:[#allocation5 + $0x8] sm:$0xff]  ;;  %v103_v2 = vld [vmem:[#allocation5] sm:$0xff]  ;;  %v327_v47 = vlaneseq }
  0x3d   :  { %706 = vmatprep.subr.mxu0 %v1041_v0  ;;  %710 = vmatprep.mubr.msk.f32.mxu0 %vm1042_vm0, %v1041_v0  ;;  %v85_v3 = vld [vmem:[#allocation2] sm:$0xff]  ;;  %vm105_vm1 = vcmask 130048   ;;  %v1104_v4 = vld [vmem:[#allocation8 + $0x78] sm:$0xff]  ;;  %v1108_v5 = vld [vmem:[#allocation8 + $0x70] sm:$0xff]  ;;  %s1043_s2 = smov [#allocation11]  }
  0x3e   :  { %713 = vmatprep.subr.mxu1 %v1041_v0  ;;  %745 = vmatprep.mubr.msk.f32.mxu1 %vm1042_vm0, %v1041_v0  ;;  %v1112_v6 = vld [vmem:[#allocation8 + $0x68] sm:$0xff]  ;;  %v1118_v7 = vld [vmem:[#allocation8 + $0x60] sm:$0xff]  ;;  %v1124_v8 = vld [vmem:[#allocation8 + $0x58] sm:$0xff]  ;;  %v1261_v48 = vshrl.u32 %v327_v47, 7  ;;  %s606_s4 = sshll.u32 %s1043_s2, 4  ;;  %s607_s4 = int_to_ptr.vmem [resolvable:$true] %s606_s4 }
  0x3f   :  { %707 = vmatpush3.msra.mxu0 %v104_v1  ;;  %714 = vmatpush3.msra.mxu1 %v1104_v4  ;;  %v1130_v9 = vld [vmem:[#allocation8 + $0x50] sm:$0xff]  ;;  %v1136_v10 = vld [vmem:[#allocation8 + $0x48] sm:$0xff]  ;;  %v1142_v11 = vld [vmem:[#allocation8 + $0x40] sm:$0xff]  ;;  %s1006_s17 = scalar_lea.vmem %s607_s4, 128  ;;  %p1011_p12 = scmp.lt.s32.totalorder %s607_s4, %s607_s4 }
  0x40   :  { %708 = vmatprep.subr.mxu0 %v1041_v0  ;;  %715 = vmatprep.subr.mxu1 %v1041_v0  ;;  %v1148_v12 = vld [vmem:[#allocation8 + $0x38] sm:$0xff]  ;;  %v1154_v13 = vld [vmem:[#allocation8 + $0x30] sm:$0xff]  ;;  %v1160_v14 = vld [vmem:[#allocation8 + $0x28] sm:$0xff]  ;;  %v329_v49 = vsub.s32 0, %v1261_v48  ;;  %v334_v51 = vsub.s32 1, %v1261_v48  ;;  %p1007_p11 = scmp.ne.s32.totalorder %s607_s4, %s1006_s17  ;;  %p1012_p13 = scmp.lt.s32.totalorder %s1006_s17, %s1006_s17 }
  0x41   :  { %709 = vmatpush3.msra.mxu0 %v103_v2  ;;  %716 = vmatpush3.msra.mxu1 %v1108_v5  ;;  %v1166_v15 = vld [vmem:[#allocation8 + $0x20] sm:$0xff]  ;;  %v1172_v16 = vld [vmem:[#allocation8 + $0x18] sm:$0xff]  ;;  %v1178_v17 = vld [vmem:[#allocation8 + $0x10] sm:$0xff] }
  0x42   :  { %711 = vmatmul.mubr.msk.f32.vlgmr.msra.gmra.mxu0 %vm105_vm1, %v85_v3  ;;  %748 = vmatprep.subr.mxu0 %v1041_v0  ;;  %v1184_v18 = vld [vmem:[#allocation8 + $0x8] sm:$0xff]  ;;  %v1198_v19 = vld [vmem:[#allocation8] sm:$0xff]  ;;  %v353_v23 = vld [vmem:[#allocation7 + $0x78] sm:$0xff]  ;;  %p1013_p0 = por %p1012_p13, %p1011_p12 }
  0x43   :  { %749 = vmatpush3.msra.mxu0 %v1104_v4  ;;  %717 = vmatprep.subr.mxu1 %v1041_v0  ;;  %v352_v24 = vld [vmem:[#allocation7 + $0x70] sm:$0xff]  ;;  %v351_v25 = vld [vmem:[#allocation7 + $0x68] sm:$0xff]  ;;  %v350_v26 = vld [vmem:[#allocation7 + $0x60] sm:$0xff] }
  0x44   :  { %750 = vmatprep.subr.mxu0 %v1041_v0  ;;  %718 = vmatpush3.msra.mxu1 %v1112_v6  ;;  %v349_v27 = vld [vmem:[#allocation7 + $0x58] sm:$0xff]  ;;  %v348_v28 = vld [vmem:[#allocation7 + $0x50] sm:$0xff]  ;;  %v347_v29 = vld [vmem:[#allocation7 + $0x48] sm:$0xff]  ;;  %p1014_p1 = pnand %p1013_p0, %p1007_p11 }
  0x45   :  { %751 = vmatpush3.msra.mxu0 %v1108_v5  ;;  %719 = vmatprep.subr.mxu1 %v1041_v0  ;;  %v346_v30 = vld [vmem:[#allocation7 + $0x40] sm:$0xff]  ;;  %v345_v31 = vld [vmem:[#allocation7 + $0x38] sm:$0xff]  ;;  %v344_v32 = vld [vmem:[#allocation7 + $0x30] sm:$0xff] }
  0x46   :  { %752 = vmatprep.subr.mxu0 %v1041_v0  ;;  %720 = vmatpush3.msra.mxu1 %v1118_v7  ;;  %v343_v33 = vld [vmem:[#allocation7 + $0x28] sm:$0xff]  ;;  %v342_v34 = vld [vmem:[#allocation7 + $0x20] sm:$0xff]  ;;  %v341_v35 = vld [vmem:[#allocation7 + $0x18] sm:$0xff] }
  0x47   :  { %753 = vmatpush3.msra.mxu0 %v1112_v6  ;;  %721 = vmatprep.subr.mxu1 %v1041_v0  ;;  %v340_v36 = vld [vmem:[#allocation7 + $0x10] sm:$0xff]  ;;  %v339_v37 = vld [vmem:[#allocation7 + $0x8] sm:$0xff]  ;;  %v338_v38 = vld [vmem:[#allocation7] sm:$0xff] }
  0x48   :  { %754 = vmatprep.subr.mxu0 %v1041_v0  ;;  %722 = vmatpush3.msra.mxu1 %v1124_v8  ;;  %v1264_v50 = vld [vmem:[#allocation10] sm:$0x3f] }
  0x49   :  { %755 = vmatpush3.msra.mxu0 %v1118_v7  ;;  %723 = vmatprep.subr.mxu1 %v1041_v0  ;;  %v330_v53 = vrot.slane %v1264_v50, %v329_v49  ;;  %v335_v56 = vrot.slane %v1264_v50, %v334_v51 }
  0x4a   :  { %756 = vmatprep.subr.mxu0 %v1041_v0  ;;  %724 = vmatpush3.msra.mxu1 %v1130_v9 }
  0x4b   :  { %757 = vmatpush3.msra.mxu0 %v1124_v8  ;;  %725 = vmatprep.subr.mxu1 %v1041_v0 }
  0x4c   :  { %758 = vmatprep.subr.mxu0 %v1041_v0  ;;  %726 = vmatpush3.msra.mxu1 %v1136_v10 }
  0x4d   :  { %759 = vmatpush3.msra.mxu0 %v1130_v9  ;;  %727 = vmatprep.subr.mxu1 %v1041_v0 }
  0x4e   :  { %760 = vmatprep.subr.mxu0 %v1041_v0  ;;  %728 = vmatpush3.msra.mxu1 %v1142_v11 }
  0x4f   :  { %761 = vmatpush3.msra.mxu0 %v1136_v10  ;;  %729 = vmatprep.subr.mxu1 %v1041_v0 }
  0x50   :  { %762 = vmatprep.subr.mxu0 %v1041_v0  ;;  %730 = vmatpush3.msra.mxu1 %v1148_v12 }
  0x51   :  { %763 = vmatpush3.msra.mxu0 %v1142_v11  ;;  %731 = vmatprep.subr.mxu1 %v1041_v0 }
  0x52   :  { %764 = vmatprep.subr.mxu0 %v1041_v0  ;;  %732 = vmatpush3.msra.mxu1 %v1154_v13 }
  0x53   :  { %765 = vmatpush3.msra.mxu0 %v1148_v12  ;;  %733 = vmatprep.subr.mxu1 %v1041_v0 }
  0x54   :  { %766 = vmatprep.subr.mxu0 %v1041_v0  ;;  %734 = vmatpush3.msra.mxu1 %v1160_v14 }
  0x55   :  { %767 = vmatpush3.msra.mxu0 %v1154_v13  ;;  %735 = vmatprep.subr.mxu1 %v1041_v0 }
  0x56   :  { %768 = vmatprep.subr.mxu0 %v1041_v0  ;;  %736 = vmatpush3.msra.mxu1 %v1166_v15 }
  0x57   :  { %769 = vmatpush3.msra.mxu0 %v1160_v14  ;;  %737 = vmatprep.subr.mxu1 %v1041_v0 }
  0x58   :  { %770 = vmatprep.subr.mxu0 %v1041_v0  ;;  %738 = vmatpush3.msra.mxu1 %v1172_v16 }
  0x59   :  { %771 = vmatpush3.msra.mxu0 %v1166_v15  ;;  %739 = vmatprep.subr.mxu1 %v1041_v0 }
  0x5a   :  { %772 = vmatprep.subr.mxu0 %v1041_v0  ;;  %740 = vmatpush3.msra.mxu1 %v1178_v17 }
  0x5b   :  { %773 = vmatpush3.msra.mxu0 %v1172_v16  ;;  %741 = vmatprep.subr.mxu1 %v1041_v0 }
  0x5c   :  { %774 = vmatprep.subr.mxu0 %v1041_v0  ;;  %742 = vmatpush3.msra.mxu1 %v1184_v18 }
  0x5d   :  { %775 = vmatpush3.msra.mxu0 %v1178_v17  ;;  %743 = vmatprep.subr.mxu1 %v1041_v0 }
  0x5e   :  { %776 = vmatprep.subr.mxu0 %v1041_v0  ;;  %780 = vmatprep.mubr.msk.f32.mxu0 %vm1042_vm0, %v1041_v0 }
  0x5f   :  { %777 = vmatpush3.msra.mxu0 %v1184_v18  ;;  %744 = vmatpush3.msra.mxu1 %v1198_v19 }
  0x60   :  { %778 = vmatprep.subr.mxu0 %v1041_v0  ;;  %783 = vmatprep.subr.mxu1 %v1041_v0 }
  0x61   :  { %779 = vmatpush3.msra.mxu0 %v1198_v19 }
  0x62   :  { %818 = vmatprep.subr.mxu0 %v1041_v0 }
 0x102   :  { %v1204_v20 = vpop.f32.mrf.mxu0 }
 0x103   :  { %v249_v21 = vmul.f32 %v1204_v20, %v1204_v20  ;;  %746 = vmatmul.mubr.f32.vlgmr.msra.gmra.mxu1 %v1204_v20 }
 0x104   :  { %v712_v22 = vpop.f32.mrf.mxu0  ;;  %815 = vmatprep.mubr.msk.f32.mxu1 %vm1042_vm0, %v1041_v0  ;;  %784 = vmatpush3.msra.mxu1 %v353_v23 }
 0x105   :  { %781 = vmatmul.mubr.f32.vlgmr.msra.gmra.mxu0 %v249_v21  ;;  %785 = vmatprep.subr.mxu1 %v1041_v0  ;;  %v596_v21 = vand.u32 127, %v327_v47 }
 0x106   :  { %819 = vmatpush3.msra.mxu0 %v1104_v4  ;;  %850 = vmatprep.mubr.msk.f32.mxu0 %vm1042_vm0, %v1041_v0 }
 0x107   :  { %820 = vmatprep.subr.mxu0 %v1041_v0  ;;  %786 = vmatpush3.msra.mxu1 %v352_v24  ;;  %vm597_vm2 = vcmp.lt.s32.totalorder %v596_v21, 64 }
 0x108   :  { %821 = vmatpush3.msra.mxu0 %v1108_v5  ;;  %787 = vmatprep.subr.mxu1 %v1041_v0 }
 0x109   :  { %822 = vmatprep.subr.mxu0 %v1041_v0  ;;  %788 = vmatpush3.msra.mxu1 %v351_v25 }
 0x10a   :  { %823 = vmatpush3.msra.mxu0 %v1112_v6  ;;  %789 = vmatprep.subr.mxu1 %v1041_v0 }
 0x10b   :  { %824 = vmatprep.subr.mxu0 %v1041_v0  ;;  %790 = vmatpush3.msra.mxu1 %v350_v26 }
 0x10c   :  { %825 = vmatpush3.msra.mxu0 %v1118_v7  ;;  %791 = vmatprep.subr.mxu1 %v1041_v0 }
 0x10d   :  { %826 = vmatprep.subr.mxu0 %v1041_v0  ;;  %792 = vmatpush3.msra.mxu1 %v349_v27 }
 0x10e   :  { %827 = vmatpush3.msra.mxu0 %v1124_v8  ;;  %793 = vmatprep.subr.mxu1 %v1041_v0 }
 0x10f   :  { %828 = vmatprep.subr.mxu0 %v1041_v0  ;;  %794 = vmatpush3.msra.mxu1 %v348_v28 }
 0x110   :  { %829 = vmatpush3.msra.mxu0 %v1130_v9  ;;  %795 = vmatprep.subr.mxu1 %v1041_v0 }
 0x111   :  { %830 = vmatprep.subr.mxu0 %v1041_v0  ;;  %796 = vmatpush3.msra.mxu1 %v347_v29 }
 0x112   :  { %831 = vmatpush3.msra.mxu0 %v1136_v10  ;;  %797 = vmatprep.subr.mxu1 %v1041_v0 }
 0x113   :  { %832 = vmatprep.subr.mxu0 %v1041_v0  ;;  %798 = vmatpush3.msra.mxu1 %v346_v30 }
 0x114   :  { %833 = vmatpush3.msra.mxu0 %v1142_v11  ;;  %799 = vmatprep.subr.mxu1 %v1041_v0 }
 0x115   :  { %834 = vmatprep.subr.mxu0 %v1041_v0  ;;  %800 = vmatpush3.msra.mxu1 %v345_v31 }
 0x116   :  { %835 = vmatpush3.msra.mxu0 %v1148_v12  ;;  %801 = vmatprep.subr.mxu1 %v1041_v0 }
 0x117   :  { %836 = vmatprep.subr.mxu0 %v1041_v0  ;;  %802 = vmatpush3.msra.mxu1 %v344_v32 }
 0x118   :  { %837 = vmatpush3.msra.mxu0 %v1154_v13  ;;  %803 = vmatprep.subr.mxu1 %v1041_v0 }
 0x119   :  { %838 = vmatprep.subr.mxu0 %v1041_v0  ;;  %804 = vmatpush3.msra.mxu1 %v343_v33 }
 0x11a   :  { %839 = vmatpush3.msra.mxu0 %v1160_v14  ;;  %805 = vmatprep.subr.mxu1 %v1041_v0 }
 0x11b   :  { %840 = vmatprep.subr.mxu0 %v1041_v0  ;;  %806 = vmatpush3.msra.mxu1 %v342_v34 }
 0x11c   :  { %841 = vmatpush3.msra.mxu0 %v1166_v15  ;;  %807 = vmatprep.subr.mxu1 %v1041_v0 }
 0x11d   :  { %842 = vmatprep.subr.mxu0 %v1041_v0  ;;  %808 = vmatpush3.msra.mxu1 %v341_v35 }
 0x11e   :  { %843 = vmatpush3.msra.mxu0 %v1172_v16  ;;  %809 = vmatprep.subr.mxu1 %v1041_v0 }
 0x11f   :  { %844 = vmatprep.subr.mxu0 %v1041_v0  ;;  %810 = vmatpush3.msra.mxu1 %v340_v36 }
 0x120   :  { %845 = vmatpush3.msra.mxu0 %v1178_v17  ;;  %811 = vmatprep.subr.mxu1 %v1041_v0 }
 0x121   :  { %846 = vmatprep.subr.mxu0 %v1041_v0  ;;  %812 = vmatpush3.msra.mxu1 %v339_v37 }
 0x122   :  { %847 = vmatpush3.msra.mxu0 %v1184_v18  ;;  %813 = vmatprep.subr.mxu1 %v1041_v0 }
 0x123   :  { %848 = vmatprep.subr.mxu0 %v1041_v0  ;;  %814 = vmatpush3.msra.mxu1 %v338_v38 }
 0x124   :  { %849 = vmatpush3.msra.mxu0 %v1198_v19  ;;  %853 = vmatprep.subr.mxu1 %v1041_v0 }
 0x1c3   :  { %v245_v39 = vpop.f32.mrf.mxu1 }
 0x1c4   :  { %v320_v40 = vmul.f32 %v245_v39, %v245_v39  ;;  %v323_v52 = vsub.f32 %v1204_v20, %v245_v39  ;;  %v592_v20 = vsub.s32 5, %v1261_v48 }
 0x1c5   :  { %v747_v41 = vpop.f32.mrf.mxu1  ;;  %v316_v42 = vpop.f32.mrf.mxu0 }
 0x1c6   :  { %v321_v43 = vsub.f32 %v316_v42, %v320_v40  ;;  %v593_v22 = vrot.slane %v1264_v50, %v592_v20 }
 0x1c7   :  { %v782_v44 = vpop.f32.mrf.mxu0 }
 0x1c8   :  { %v322_v45 = vmax.f32 %v321_v43, 0.0 }
 0x1ca   :  { %v324_v46 = vadd.f32 1e-05, %v322_v45 }
 0x1cc   :  { %898 = vrsqrt.f32 %v324_v46 }
 0x1d9   :  { %v899_v54 = vpop.eup %898 }
 0x1da   :  { %v326_v55 = vmul.f32 %v899_v54, %v323_v52 }
 0x1dc   :  { %v331_v57 = vmul.f32 %v330_v53, %v326_v55 }
 0x1de   :  { %v336_v58 = vadd.f32 %v335_v56, %v331_v57 }
 0x1e0   :  { %900 = vtanh.f32 %v336_v58 }
 0x1ed   :  { %v901_v59 = vpop.eup %900 }
 0x1ee   :  { %816 = vmatmul.mubr.f32.vlgmr.msra.gmra.mxu1 %v901_v59 }
 0x1ef   :  { %854 = vmatpush3.msra.mxu1 %v1104_v4  ;;  %885 = vmatprep.mubr.msk.f32.mxu1 %vm1042_vm0, %v1041_v0 }
 0x1f0   :  { %855 = vmatprep.subr.mxu1 %v1041_v0 }
 0x1f1   :  { %856 = vmatpush3.msra.mxu1 %v1108_v5 }
 0x1f2   :  { %857 = vmatprep.subr.mxu1 %v1041_v0 }
 0x1f3   :  { %858 = vmatpush3.msra.mxu1 %v1112_v6 }
 0x1f4   :  { %859 = vmatprep.subr.mxu1 %v1041_v0 }
 0x1f5   :  { %860 = vmatpush3.msra.mxu1 %v1118_v7 }
 0x1f6   :  { %861 = vmatprep.subr.mxu1 %v1041_v0 }
 0x1f7   :  { %862 = vmatpush3.msra.mxu1 %v1124_v8  ;;  %v574_v8 = vsub.s32 2, %v1261_v48 }
 0x1f8   :  { %863 = vmatprep.subr.mxu1 %v1041_v0 }
 0x1f9   :  { %864 = vmatpush3.msra.mxu1 %v1130_v9 }
 0x1fa   :  { %865 = vmatprep.subr.mxu1 %v1041_v0 }
 0x1fb   :  { %866 = vmatpush3.msra.mxu1 %v1136_v10  ;;  %v575_v10 = vrot.slane %v1264_v50, %v574_v8 }
 0x1fc   :  { %867 = vmatprep.subr.mxu1 %v1041_v0 }
 0x1fd   :  { %868 = vmatpush3.msra.mxu1 %v1142_v11 }
 0x1fe   :  { %869 = vmatprep.subr.mxu1 %v1041_v0 }
 0x1ff   :  { %870 = vmatpush3.msra.mxu1 %v1148_v12 }
 0x200   :  { %871 = vmatprep.subr.mxu1 %v1041_v0 }
 0x201   :  { %872 = vmatpush3.msra.mxu1 %v1154_v13 }
 0x202   :  { %873 = vmatprep.subr.mxu1 %v1041_v0 }
 0x203   :  { %874 = vmatpush3.msra.mxu1 %v1160_v14 }
 0x204   :  { %875 = vmatprep.subr.mxu1 %v1041_v0 }
 0x205   :  { %876 = vmatpush3.msra.mxu1 %v1166_v15 }
 0x206   :  { %877 = vmatprep.subr.mxu1 %v1041_v0 }
 0x207   :  { %878 = vmatpush3.msra.mxu1 %v1172_v16  ;;  %v585_v16 = vsub.s32 4, %v1261_v48 }
 0x208   :  { %879 = vmatprep.subr.mxu1 %v1041_v0 }
 0x209   :  { %880 = vmatpush3.msra.mxu1 %v1178_v17  ;;  %v586_v17 = vrot.slane %v1264_v50, %v585_v16 }
 0x20a   :  { %881 = vmatprep.subr.mxu1 %v1041_v0 }
 0x20b   :  { %882 = vmatpush3.msra.mxu1 %v1184_v18 }
 0x20c   :  { %883 = vmatprep.subr.mxu1 %v1041_v0  ;;  %v579_v0 = vsub.s32 3, %v1261_v48 }
 0x20d   :  { %884 = vmatpush3.msra.mxu1 %v1198_v19 }
 0x20e   :  { %v580_v13 = vrot.slane %v1264_v50, %v579_v0 }
 0x2ae   :  { %v420_v60 = vpop.f32.mrf.mxu1 }
 0x2af   :  { %v494_v61 = vmul.f32 %v420_v60, %v420_v60  ;;  %851 = vmatmul.mubr.f32.vlgmr.msra.gmra.mxu0 %v420_v60 }
 0x2b0   :  { %v817_v62 = vpop.f32.mrf.mxu1 }
 0x2b1   :  { %886 = vmatmul.mubr.f32.vlgmr.msra.gmra.mxu1 %v494_v61 }
 0x36f   :  { %v490_v63 = vpop.f32.mrf.mxu0 }
 0x370   :  { %v565_v1 = vmul.f32 %v490_v63, %v490_v63  ;;  %v568_v9 = vsub.f32 %v420_v60, %v490_v63 }
 0x371   :  { %v852_v2 = vpop.f32.mrf.mxu0  ;;  %v561_v3 = vpop.f32.mrf.mxu1 }
 0x372   :  { %v566_v4 = vsub.f32 %v561_v3, %v565_v1 }
 0x373   :  { %v887_v5 = vpop.f32.mrf.mxu1 }
 0x374   :  { %v567_v6 = vmax.f32 %v566_v4, 0.0 }
 0x376   :  { %v569_v7 = vadd.f32 1e-05, %v567_v6 }
 0x378   :  { %902 = vrsqrt.f32 %v569_v7 }
 0x385   :  { %v903_v11 = vpop.eup %902 }
 0x386   :  { %v571_v12 = vmul.f32 %v903_v11, %v568_v9 }
 0x388   :  { %v576_v14 = vmul.f32 %v575_v10, %v571_v12 }
 0x38a   :  { %v581_v15 = vadd.f32 %v580_v13, %v576_v14 }
 0x38c   :  { %904 = vtanh.f32 %v581_v15 }
 0x399   :  { %v905_v18 = vpop.eup %904 }
 0x39a   :  { %v587_v19 = vmul.f32 %v905_v18, %v586_v17 }
 0x39c   :  { %588 = vadd.xlane.f32.xlu0 %v587_v19 }
 0x425   :  { %v589_v23 = vpop.xlane.xlu0 %588 }
 0x426   :  { %v594_v24 = vadd.f32 %v593_v22, %v589_v23 }
 0x428   :  { %v598_v25 = vsel %vm597_vm2, %v905_v18, %v594_v24 }
 0x429   :  { %599 = vst [vmem:[#allocation11] sm:$0xff] %v598_v25 }
 0x42a   :  { %1017 = shalt.err (!%p1014_p1)
}
 0x42b   :  { %609 = dma.vmem_to_hbm [thread:$0]  %s607_s4, 128, %s1320_s5, [#allocation4]  }
 0x42c   :  { %1032 = dma.done.wait [#allocation4], 128  }
 0x42d   :  { %1033 = vsyncadd [#allocation4], 4294967168 }
 0x42e   :  { %613 = vsyncpa [#allocation3], 1 }
 0x42f   :  { %614 = vsyncpa [#allocation6], 1 }
 0x430   :  { %615 = vsyncpa [#allocation9], 1 }
 0x431   :  { %616 = vsyncpa [#allocation4], 1 }

</bundles_post_ra>
